<compile_context>
chip_gen: v7x
topology: tpu7x:2x2x1
jax: 0.10.0
libtpu: 0.0.40
codegen_flags: <defaults>
</compile_context>

<pallas_src>
import functools

import jax
import jax.numpy as jnp
from jax.experimental import pallas as pl
from jax.experimental.pallas import tpu as pltpu

# Layer dimensions of the PyTorch module.
D_IN, D_H, D_OUT = 8, 10, 4
_PACK = 16    # padded slab size per layer (holds [W | b] with room to spare)
_LANES = 128  # TPU lane width


def _round_up(n, m):
    return ((n + m - 1) // m) * m


def _pick_tile(batch, tile_b):
    """Clamp the lane tile to the batch, keep >= 2 grid steps when possible.

    >= 2 steps lets dimension_semantics=("parallel",) shard the batch across
    both TensorCores on v7x; the tile is always a multiple of 128 lanes.
    """
    t = min(tile_b, batch)
    if batch >= 2 * _LANES:
        t = min(t, _round_up((batch + 1) // 2, _LANES))
    return max(_round_up(t, _LANES), _LANES)


def _dense_vpu(wb, x, n_in, n_out, relu):
    """y = W @ x + b on the VPU via an unrolled broadcast-MAC (no MXU).

    wb : (16, 16) packed slab for one layer; wb[:n_out, :n_in] = W (out, in),
         wb[:n_out, n_in] = b.
    x  : (n_in, TILE_B) f32, batch on the lane axis.
    returns (n_out, TILE_B) f32.
    """
    tb = x.shape[1]
    bias = wb[0:n_out, n_in:n_in + 1]                  # (n_out, 1)
    acc = jnp.broadcast_to(bias, (n_out, tb))          # hoisted, once per layer
    for k in range(n_in):                              # unrolled small contraction
        # (n_out, 1) * (1, TILE_B) -> (n_out, TILE_B): pure VALU broadcast-MAC
        acc = acc + wb[0:n_out, k:k + 1] * x[k:k + 1, :]
    if relu:
        acc = jnp.maximum(acc, 0.0)
    return acc


def mlp_kernel(x_ref, p_ref, o_ref):
    # x_ref: (D_IN, TILE_B) bf16   p_ref: (3, 16, 16) f32   o_ref: (D_OUT, TILE_B) bf16
    x = x_ref[...].astype(jnp.float32)                 # upcast once; compute in f32
    h = _dense_vpu(p_ref[0], x, D_IN, D_H, relu=True)  # fc1 + ReLU
    h = _dense_vpu(p_ref[1], h, D_H, D_H, relu=True)   # fc2 + ReLU
    out = _dense_vpu(p_ref[2], h, D_H, D_OUT, relu=False)  # fc3
    o_ref[...] = out.astype(o_ref.dtype)               # bf16 writeback


@functools.partial(jax.jit, static_argnames=("tile_b", "vmem_limit_bytes"))
def policy_forward_lanes(x_t, packed_params, *, tile_b=32768, vmem_limit_bytes=None):
    """Fast path: x_t (8, B) bf16 (batch on lanes, B % 128 == 0) -> (4, B) bf16.

    No wrapper-side pad/transpose/cast: the producer supplies lane-major bf16
    and consumes the (4, B) bf16 result directly.  tile_b: sweep 16K/32K/64K
    per the perf review; pass vmem_limit_bytes if you push past ~128K lanes.
    """
    d, batch = x_t.shape
    if d != D_IN or batch % _LANES != 0:
        raise ValueError("x_t must be (8, B) with B a multiple of 128")
    tile = _pick_tile(batch, tile_b)

    return pl.pallas_call(
        mlp_kernel,
        out_shape=jax.ShapeDtypeStruct((D_OUT, batch), jnp.bfloat16),
        grid_spec=pltpu.PrefetchScalarGridSpec(
            num_scalar_prefetch=0,
            grid=(pl.cdiv(batch, tile),),
            in_specs=[
                # activations: tiled over the batch (lane) axis, bf16 DMA
                pl.BlockSpec((D_IN, tile), lambda i: (0, i)),
                # packed params: constant block index -> VMEM-resident, no re-DMA
                pl.BlockSpec((3, _PACK, _PACK), lambda i: (0, 0, 0)),
            ],
            out_specs=pl.BlockSpec((D_OUT, tile), lambda i: (0, i)),
        ),
        compiler_params=pltpu.CompilerParams(
            dimension_semantics=("parallel",),   # shard batch across TCs on v7x
            vmem_limit_bytes=vmem_limit_bytes,   # default scoped limit is plenty
        ),
    )(x_t, packed_params)


@functools.partial(jax.jit, static_argnames=("tile_b",))
def policy_network_forward(x, packed_params, *, tile_b=32768):
    """Module-spec compatibility shim: x (B, 8) f32 -> (B, 4) f32.

    NOTE: the transpose/cast/pad below and the final slice/transpose are extra
    HBM passes over the activations.  Large-batch callers should use
    `policy_forward_lanes` with (8, B) bf16 in / (4, B) bf16 out directly.
    """
    B = x.shape[0]
    Bp = _round_up(max(B, 1), _LANES)
    x_t = jnp.pad(x.astype(jnp.bfloat16).T, ((0, 0), (0, Bp - B)))
    out_t = policy_forward_lanes(x_t, packed_params, tile_b=tile_b)
    return out_t[:, :B].T.astype(jnp.float32)


def init_params(key):
    """PyTorch nn.Linear default init; weights kept in torch (out, in) layout."""
    def linear(k, fan_in, fan_out):
        kw, kb = jax.random.split(k)
        bound = 1.0 / jnp.sqrt(jnp.float32(fan_in))
        w = jax.random.uniform(kw, (fan_out, fan_in), jnp.float32, -bound, bound)
        b = jax.random.uniform(kb, (fan_out,), jnp.float32, -bound, bound)
        return w, b

    k1, k2, k3 = jax.random.split(key, 3)
    w1, b1 = linear(k1, D_IN, D_H)
    w2, b2 = linear(k2, D_H, D_H)
    w3, b3 = linear(k3, D_H, D_OUT)
    return (w1, b1, w2, b2, w3, b3)


def pack_params(params):
    """Pack (w1,b1,w2,b2,w3,b3) into one (3, 16, 16) f32 slab: [W | b] per layer."""
    w1, b1, w2, b2, w3, b3 = params
    slab = jnp.zeros((3, _PACK, _PACK), jnp.float32)
    for layer, (w, b) in enumerate(((w1, b1), (w2, b2), (w3, b3))):
        o, i = w.shape
        slab = slab.at[layer, :o, :i].set(w.astype(jnp.float32))
        slab = slab.at[layer, :o, i].set(b.reshape(o).astype(jnp.float32))
    return slab


def reference_forward(x, params):
    w1, b1, w2, b2, w3, b3 = params
    h = jnp.maximum(x @ w1.T + b1, 0.0)
    h = jnp.maximum(h @ w2.T + b2, 0.0)
    return h @ w3.T + b3


if __name__ == "__main__":
    key = jax.random.PRNGKey(0)
    kx, kp = jax.random.split(key)
    params = init_params(kp)
    packed = pack_params(params)

    # Inputs are rounded to bf16 on the DMA path and the output is emitted as
    # bf16 (accumulation is f32), so we compare against a reference evaluated
    # on the identically-rounded input with a bf16-level tolerance.

    # 1) Module-spec path: (B, 8) f32 -> (B, 4) f32 (small demo batch).
    B = 64
    x = jax.random.normal(kx, (B, D_IN), jnp.float32)
    out = jax.block_until_ready(policy_network_forward(x, packed))
    x_r = x.astype(jnp.bfloat16).astype(jnp.float32)
    ref = reference_forward(x_r, params)
    assert out.shape == (B, D_OUT)
    assert jnp.allclose(out, ref, atol=2e-2, rtol=2e-2), "mismatch vs reference (shim path)"

    # 2) Lane-major fast path: (8, B2) bf16 -> (4, B2) bf16, grid of 2 steps.
    B2 = 4096
    x2 = jax.random.normal(kx, (B2, D_IN), jnp.float32)
    x2_t = x2.T.astype(jnp.bfloat16)           # producer-side layout (no kernel-side pad)
    out2 = jax.block_until_ready(policy_forward_lanes(x2_t, packed))
    ref2 = reference_forward(x2.astype(jnp.bfloat16).astype(jnp.float32), params)
    assert out2.shape == (D_OUT, B2)
    assert jnp.allclose(out2.T.astype(jnp.float32), ref2, atol=2e-2, rtol=2e-2), \
        "mismatch vs reference (fast path)"

    print("KERNEL_OK")
</pallas_src>

<mosaic_0001>
module attributes {stable_mosaic.version = 11 : i64} {
  func.func @mlp_kernel(%arg0: i32, %arg1: memref<8x128xbf16, #tpu.memory_space<vmem>>, %arg2: memref<3x16x16xf32, #tpu.memory_space<vmem>>, %arg3: memref<4x128xbf16, #tpu.memory_space<vmem>>) attributes {dimension_semantics = [#tpu.dimension_semantics<parallel>], iteration_bounds = array<i64: 1>, scalar_prefetch = 0 : i64, scratch_operands = 0 : i64, tpu.core_type = #tpu.core_type<tc>, window_params = [{transform_indices = @transform_0, window_bounds = array<i64: 8, 128>}, {pipeline_mode = #tpu.pipeline_mode<synchronous>, transform_indices = @transform_1, window_bounds = array<i64: 3, 16, 16>}, {transform_indices = @transform_2, window_bounds = array<i64: 4, 128>}]} {
    %c0 = arith.constant 0 : index
    %c0_0 = arith.constant 0 : index
    %0 = vector.load %arg1[%c0, %c0_0] : memref<8x128xbf16, #tpu.memory_space<vmem>>, vector<8x128xbf16>
    %1 = arith.extf %0 : vector<8x128xbf16> to vector<8x128xf32>
    %c0_1 = arith.constant 0 : index
    %c0_2 = arith.constant 0 : index
    %c0_3 = arith.constant 0 : index
    %2 = vector.load %arg2[%c0_1, %c0_2, %c0_3] : memref<3x16x16xf32, #tpu.memory_space<vmem>>, vector<1x16x16xf32>
    %3 = vector.shape_cast %2 : vector<1x16x16xf32> to vector<16x16xf32>
    %4 = vector.extract_strided_slice %3 {offsets = [0, 8], sizes = [10, 1], strides = [1, 1]} : vector<16x16xf32> to vector<10x1xf32>
    %5 = vector.shape_cast %4 : vector<10x1xf32> to vector<10x1xf32>
    %6 = vector.broadcast %5 : vector<10x1xf32> to vector<10x128xf32>
    %7 = vector.extract_strided_slice %3 {offsets = [0, 0], sizes = [10, 1], strides = [1, 1]} : vector<16x16xf32> to vector<10x1xf32>
    %8 = vector.extract_strided_slice %1 {offsets = [0, 0], sizes = [1, 128], strides = [1, 1]} : vector<8x128xf32> to vector<1x128xf32>
    %9 = vector.broadcast %7 : vector<10x1xf32> to vector<10x128xf32>
    %10 = vector.broadcast %8 : vector<1x128xf32> to vector<10x128xf32>
    %11 = arith.mulf %9, %10 : vector<10x128xf32>
    %12 = arith.addf %6, %11 : vector<10x128xf32>
    %13 = vector.extract_strided_slice %3 {offsets = [0, 1], sizes = [10, 1], strides = [1, 1]} : vector<16x16xf32> to vector<10x1xf32>
    %14 = vector.extract_strided_slice %1 {offsets = [1, 0], sizes = [1, 128], strides = [1, 1]} : vector<8x128xf32> to vector<1x128xf32>
    %15 = vector.broadcast %13 : vector<10x1xf32> to vector<10x128xf32>
    %16 = vector.broadcast %14 : vector<1x128xf32> to vector<10x128xf32>
    %17 = arith.mulf %15, %16 : vector<10x128xf32>
    %18 = arith.addf %12, %17 : vector<10x128xf32>
    %19 = vector.extract_strided_slice %3 {offsets = [0, 2], sizes = [10, 1], strides = [1, 1]} : vector<16x16xf32> to vector<10x1xf32>
    %20 = vector.extract_strided_slice %1 {offsets = [2, 0], sizes = [1, 128], strides = [1, 1]} : vector<8x128xf32> to vector<1x128xf32>
    %21 = vector.broadcast %19 : vector<10x1xf32> to vector<10x128xf32>
    %22 = vector.broadcast %20 : vector<1x128xf32> to vector<10x128xf32>
    %23 = arith.mulf %21, %22 : vector<10x128xf32>
    %24 = arith.addf %18, %23 : vector<10x128xf32>
    %25 = vector.extract_strided_slice %3 {offsets = [0, 3], sizes = [10, 1], strides = [1, 1]} : vector<16x16xf32> to vector<10x1xf32>
    %26 = vector.extract_strided_slice %1 {offsets = [3, 0], sizes = [1, 128], strides = [1, 1]} : vector<8x128xf32> to vector<1x128xf32>
    %27 = vector.broadcast %25 : vector<10x1xf32> to vector<10x128xf32>
    %28 = vector.broadcast %26 : vector<1x128xf32> to vector<10x128xf32>
    %29 = arith.mulf %27, %28 : vector<10x128xf32>
    %30 = arith.addf %24, %29 : vector<10x128xf32>
    %31 = vector.extract_strided_slice %3 {offsets = [0, 4], sizes = [10, 1], strides = [1, 1]} : vector<16x16xf32> to vector<10x1xf32>
    %32 = vector.extract_strided_slice %1 {offsets = [4, 0], sizes = [1, 128], strides = [1, 1]} : vector<8x128xf32> to vector<1x128xf32>
    %33 = vector.broadcast %31 : vector<10x1xf32> to vector<10x128xf32>
    %34 = vector.broadcast %32 : vector<1x128xf32> to vector<10x128xf32>
    %35 = arith.mulf %33, %34 : vector<10x128xf32>
    %36 = arith.addf %30, %35 : vector<10x128xf32>
    %37 = vector.extract_strided_slice %3 {offsets = [0, 5], sizes = [10, 1], strides = [1, 1]} : vector<16x16xf32> to vector<10x1xf32>
    %38 = vector.extract_strided_slice %1 {offsets = [5, 0], sizes = [1, 128], strides = [1, 1]} : vector<8x128xf32> to vector<1x128xf32>
    %39 = vector.broadcast %37 : vector<10x1xf32> to vector<10x128xf32>
    %40 = vector.broadcast %38 : vector<1x128xf32> to vector<10x128xf32>
    %41 = arith.mulf %39, %40 : vector<10x128xf32>
    %42 = arith.addf %36, %41 : vector<10x128xf32>
    %43 = vector.extract_strided_slice %3 {offsets = [0, 6], sizes = [10, 1], strides = [1, 1]} : vector<16x16xf32> to vector<10x1xf32>
    %44 = vector.extract_strided_slice %1 {offsets = [6, 0], sizes = [1, 128], strides = [1, 1]} : vector<8x128xf32> to vector<1x128xf32>
    %45 = vector.broadcast %43 : vector<10x1xf32> to vector<10x128xf32>
    %46 = vector.broadcast %44 : vector<1x128xf32> to vector<10x128xf32>
    %47 = arith.mulf %45, %46 : vector<10x128xf32>
    %48 = arith.addf %42, %47 : vector<10x128xf32>
    %49 = vector.extract_strided_slice %3 {offsets = [0, 7], sizes = [10, 1], strides = [1, 1]} : vector<16x16xf32> to vector<10x1xf32>
    %50 = vector.extract_strided_slice %1 {offsets = [7, 0], sizes = [1, 128], strides = [1, 1]} : vector<8x128xf32> to vector<1x128xf32>
    %51 = vector.broadcast %49 : vector<10x1xf32> to vector<10x128xf32>
    %52 = vector.broadcast %50 : vector<1x128xf32> to vector<10x128xf32>
    %53 = arith.mulf %51, %52 : vector<10x128xf32>
    %54 = arith.addf %48, %53 : vector<10x128xf32>
    %cst = arith.constant 0.000000e+00 : f32
    %55 = vector.broadcast %cst : f32 to vector<10x128xf32>
    %56 = arith.maximumf %54, %55 : vector<10x128xf32>
    %c1 = arith.constant 1 : index
    %c0_4 = arith.constant 0 : index
    %c0_5 = arith.constant 0 : index
    %57 = vector.load %arg2[%c1, %c0_4, %c0_5] : memref<3x16x16xf32, #tpu.memory_space<vmem>>, vector<1x16x16xf32>
    %58 = vector.shape_cast %57 : vector<1x16x16xf32> to vector<16x16xf32>
    %59 = vector.extract_strided_slice %58 {offsets = [0, 10], sizes = [10, 1], strides = [1, 1]} : vector<16x16xf32> to vector<10x1xf32>
    %60 = vector.shape_cast %59 : vector<10x1xf32> to vector<10x1xf32>
    %61 = vector.broadcast %60 : vector<10x1xf32> to vector<10x128xf32>
    %62 = vector.extract_strided_slice %58 {offsets = [0, 0], sizes = [10, 1], strides = [1, 1]} : vector<16x16xf32> to vector<10x1xf32>
    %63 = vector.extract_strided_slice %56 {offsets = [0, 0], sizes = [1, 128], strides = [1, 1]} : vector<10x128xf32> to vector<1x128xf32>
    %64 = vector.broadcast %62 : vector<10x1xf32> to vector<10x128xf32>
    %65 = vector.broadcast %63 : vector<1x128xf32> to vector<10x128xf32>
    %66 = arith.mulf %64, %65 : vector<10x128xf32>
    %67 = arith.addf %61, %66 : vector<10x128xf32>
    %68 = vector.extract_strided_slice %58 {offsets = [0, 1], sizes = [10, 1], strides = [1, 1]} : vector<16x16xf32> to vector<10x1xf32>
    %69 = vector.extract_strided_slice %56 {offsets = [1, 0], sizes = [1, 128], strides = [1, 1]} : vector<10x128xf32> to vector<1x128xf32>
    %70 = vector.broadcast %68 : vector<10x1xf32> to vector<10x128xf32>
    %71 = vector.broadcast %69 : vector<1x128xf32> to vector<10x128xf32>
    %72 = arith.mulf %70, %71 : vector<10x128xf32>
    %73 = arith.addf %67, %72 : vector<10x128xf32>
    %74 = vector.extract_strided_slice %58 {offsets = [0, 2], sizes = [10, 1], strides = [1, 1]} : vector<16x16xf32> to vector<10x1xf32>
    %75 = vector.extract_strided_slice %56 {offsets = [2, 0], sizes = [1, 128], strides = [1, 1]} : vector<10x128xf32> to vector<1x128xf32>
    %76 = vector.broadcast %74 : vector<10x1xf32> to vector<10x128xf32>
    %77 = vector.broadcast %75 : vector<1x128xf32> to vector<10x128xf32>
    %78 = arith.mulf %76, %77 : vector<10x128xf32>
    %79 = arith.addf %73, %78 : vector<10x128xf32>
    %80 = vector.extract_strided_slice %58 {offsets = [0, 3], sizes = [10, 1], strides = [1, 1]} : vector<16x16xf32> to vector<10x1xf32>
    %81 = vector.extract_strided_slice %56 {offsets = [3, 0], sizes = [1, 128], strides = [1, 1]} : vector<10x128xf32> to vector<1x128xf32>
    %82 = vector.broadcast %80 : vector<10x1xf32> to vector<10x128xf32>
    %83 = vector.broadcast %81 : vector<1x128xf32> to vector<10x128xf32>
    %84 = arith.mulf %82, %83 : vector<10x128xf32>
    %85 = arith.addf %79, %84 : vector<10x128xf32>
    %86 = vector.extract_strided_slice %58 {offsets = [0, 4], sizes = [10, 1], strides = [1, 1]} : vector<16x16xf32> to vector<10x1xf32>
    %87 = vector.extract_strided_slice %56 {offsets = [4, 0], sizes = [1, 128], strides = [1, 1]} : vector<10x128xf32> to vector<1x128xf32>
    %88 = vector.broadcast %86 : vector<10x1xf32> to vector<10x128xf32>
    %89 = vector.broadcast %87 : vector<1x128xf32> to vector<10x128xf32>
    %90 = arith.mulf %88, %89 : vector<10x128xf32>
    %91 = arith.addf %85, %90 : vector<10x128xf32>
    %92 = vector.extract_strided_slice %58 {offsets = [0, 5], sizes = [10, 1], strides = [1, 1]} : vector<16x16xf32> to vector<10x1xf32>
    %93 = vector.extract_strided_slice %56 {offsets = [5, 0], sizes = [1, 128], strides = [1, 1]} : vector<10x128xf32> to vector<1x128xf32>
    %94 = vector.broadcast %92 : vector<10x1xf32> to vector<10x128xf32>
    %95 = vector.broadcast %93 : vector<1x128xf32> to vector<10x128xf32>
    %96 = arith.mulf %94, %95 : vector<10x128xf32>
    %97 = arith.addf %91, %96 : vector<10x128xf32>
    %98 = vector.extract_strided_slice %58 {offsets = [0, 6], sizes = [10, 1], strides = [1, 1]} : vector<16x16xf32> to vector<10x1xf32>
    %99 = vector.extract_strided_slice %56 {offsets = [6, 0], sizes = [1, 128], strides = [1, 1]} : vector<10x128xf32> to vector<1x128xf32>
    %100 = vector.broadcast %98 : vector<10x1xf32> to vector<10x128xf32>
    %101 = vector.broadcast %99 : vector<1x128xf32> to vector<10x128xf32>
    %102 = arith.mulf %100, %101 : vector<10x128xf32>
    %103 = arith.addf %97, %102 : vector<10x128xf32>
    %104 = vector.extract_strided_slice %58 {offsets = [0, 7], sizes = [10, 1], strides = [1, 1]} : vector<16x16xf32> to vector<10x1xf32>
    %105 = vector.extract_strided_slice %56 {offsets = [7, 0], sizes = [1, 128], strides = [1, 1]} : vector<10x128xf32> to vector<1x128xf32>
    %106 = vector.broadcast %104 : vector<10x1xf32> to vector<10x128xf32>
    %107 = vector.broadcast %105 : vector<1x128xf32> to vector<10x128xf32>
    %108 = arith.mulf %106, %107 : vector<10x128xf32>
    %109 = arith.addf %103, %108 : vector<10x128xf32>
    %110 = vector.extract_strided_slice %58 {offsets = [0, 8], sizes = [10, 1], strides = [1, 1]} : vector<16x16xf32> to vector<10x1xf32>
    %111 = vector.extract_strided_slice %56 {offsets = [8, 0], sizes = [1, 128], strides = [1, 1]} : vector<10x128xf32> to vector<1x128xf32>
    %112 = vector.broadcast %110 : vector<10x1xf32> to vector<10x128xf32>
    %113 = vector.broadcast %111 : vector<1x128xf32> to vector<10x128xf32>
    %114 = arith.mulf %112, %113 : vector<10x128xf32>
    %115 = arith.addf %109, %114 : vector<10x128xf32>
    %116 = vector.extract_strided_slice %58 {offsets = [0, 9], sizes = [10, 1], strides = [1, 1]} : vector<16x16xf32> to vector<10x1xf32>
    %117 = vector.extract_strided_slice %56 {offsets = [9, 0], sizes = [1, 128], strides = [1, 1]} : vector<10x128xf32> to vector<1x128xf32>
    %118 = vector.broadcast %116 : vector<10x1xf32> to vector<10x128xf32>
    %119 = vector.broadcast %117 : vector<1x128xf32> to vector<10x128xf32>
    %120 = arith.mulf %118, %119 : vector<10x128xf32>
    %121 = arith.addf %115, %120 : vector<10x128xf32>
    %cst_6 = arith.constant 0.000000e+00 : f32
    %122 = vector.broadcast %cst_6 : f32 to vector<10x128xf32>
    %123 = arith.maximumf %121, %122 : vector<10x128xf32>
    %c2 = arith.constant 2 : index
    %c0_7 = arith.constant 0 : index
    %c0_8 = arith.constant 0 : index
    %124 = vector.load %arg2[%c2, %c0_7, %c0_8] : memref<3x16x16xf32, #tpu.memory_space<vmem>>, vector<1x16x16xf32>
    %125 = vector.shape_cast %124 : vector<1x16x16xf32> to vector<16x16xf32>
    %126 = vector.extract_strided_slice %125 {offsets = [0, 10], sizes = [4, 1], strides = [1, 1]} : vector<16x16xf32> to vector<4x1xf32>
    %127 = vector.shape_cast %126 : vector<4x1xf32> to vector<4x1xf32>
    %128 = vector.broadcast %127 : vector<4x1xf32> to vector<4x128xf32>
    %129 = vector.extract_strided_slice %125 {offsets = [0, 0], sizes = [4, 1], strides = [1, 1]} : vector<16x16xf32> to vector<4x1xf32>
    %130 = vector.extract_strided_slice %123 {offsets = [0, 0], sizes = [1, 128], strides = [1, 1]} : vector<10x128xf32> to vector<1x128xf32>
    %131 = vector.broadcast %129 : vector<4x1xf32> to vector<4x128xf32>
    %132 = vector.broadcast %130 : vector<1x128xf32> to vector<4x128xf32>
    %133 = arith.mulf %131, %132 : vector<4x128xf32>
    %134 = arith.addf %128, %133 : vector<4x128xf32>
    %135 = vector.extract_strided_slice %125 {offsets = [0, 1], sizes = [4, 1], strides = [1, 1]} : vector<16x16xf32> to vector<4x1xf32>
    %136 = vector.extract_strided_slice %123 {offsets = [1, 0], sizes = [1, 128], strides = [1, 1]} : vector<10x128xf32> to vector<1x128xf32>
    %137 = vector.broadcast %135 : vector<4x1xf32> to vector<4x128xf32>
    %138 = vector.broadcast %136 : vector<1x128xf32> to vector<4x128xf32>
    %139 = arith.mulf %137, %138 : vector<4x128xf32>
    %140 = arith.addf %134, %139 : vector<4x128xf32>
    %141 = vector.extract_strided_slice %125 {offsets = [0, 2], sizes = [4, 1], strides = [1, 1]} : vector<16x16xf32> to vector<4x1xf32>
    %142 = vector.extract_strided_slice %123 {offsets = [2, 0], sizes = [1, 128], strides = [1, 1]} : vector<10x128xf32> to vector<1x128xf32>
    %143 = vector.broadcast %141 : vector<4x1xf32> to vector<4x128xf32>
    %144 = vector.broadcast %142 : vector<1x128xf32> to vector<4x128xf32>
    %145 = arith.mulf %143, %144 : vector<4x128xf32>
    %146 = arith.addf %140, %145 : vector<4x128xf32>
    %147 = vector.extract_strided_slice %125 {offsets = [0, 3], sizes = [4, 1], strides = [1, 1]} : vector<16x16xf32> to vector<4x1xf32>
    %148 = vector.extract_strided_slice %123 {offsets = [3, 0], sizes = [1, 128], strides = [1, 1]} : vector<10x128xf32> to vector<1x128xf32>
    %149 = vector.broadcast %147 : vector<4x1xf32> to vector<4x128xf32>
    %150 = vector.broadcast %148 : vector<1x128xf32> to vector<4x128xf32>
    %151 = arith.mulf %149, %150 : vector<4x128xf32>
    %152 = arith.addf %146, %151 : vector<4x128xf32>
    %153 = vector.extract_strided_slice %125 {offsets = [0, 4], sizes = [4, 1], strides = [1, 1]} : vector<16x16xf32> to vector<4x1xf32>
    %154 = vector.extract_strided_slice %123 {offsets = [4, 0], sizes = [1, 128], strides = [1, 1]} : vector<10x128xf32> to vector<1x128xf32>
    %155 = vector.broadcast %153 : vector<4x1xf32> to vector<4x128xf32>
    %156 = vector.broadcast %154 : vector<1x128xf32> to vector<4x128xf32>
    %157 = arith.mulf %155, %156 : vector<4x128xf32>
    %158 = arith.addf %152, %157 : vector<4x128xf32>
    %159 = vector.extract_strided_slice %125 {offsets = [0, 5], sizes = [4, 1], strides = [1, 1]} : vector<16x16xf32> to vector<4x1xf32>
    %160 = vector.extract_strided_slice %123 {offsets = [5, 0], sizes = [1, 128], strides = [1, 1]} : vector<10x128xf32> to vector<1x128xf32>
    %161 = vector.broadcast %159 : vector<4x1xf32> to vector<4x128xf32>
    %162 = vector.broadcast %160 : vector<1x128xf32> to vector<4x128xf32>
    %163 = arith.mulf %161, %162 : vector<4x128xf32>
    %164 = arith.addf %158, %163 : vector<4x128xf32>
    %165 = vector.extract_strided_slice %125 {offsets = [0, 6], sizes = [4, 1], strides = [1, 1]} : vector<16x16xf32> to vector<4x1xf32>
    %166 = vector.extract_strided_slice %123 {offsets = [6, 0], sizes = [1, 128], strides = [1, 1]} : vector<10x128xf32> to vector<1x128xf32>
    %167 = vector.broadcast %165 : vector<4x1xf32> to vector<4x128xf32>
    %168 = vector.broadcast %166 : vector<1x128xf32> to vector<4x128xf32>
    %169 = arith.mulf %167, %168 : vector<4x128xf32>
    %170 = arith.addf %164, %169 : vector<4x128xf32>
    %171 = vector.extract_strided_slice %125 {offsets = [0, 7], sizes = [4, 1], strides = [1, 1]} : vector<16x16xf32> to vector<4x1xf32>
    %172 = vector.extract_strided_slice %123 {offsets = [7, 0], sizes = [1, 128], strides = [1, 1]} : vector<10x128xf32> to vector<1x128xf32>
    %173 = vector.broadcast %171 : vector<4x1xf32> to vector<4x128xf32>
    %174 = vector.broadcast %172 : vector<1x128xf32> to vector<4x128xf32>
    %175 = arith.mulf %173, %174 : vector<4x128xf32>
    %176 = arith.addf %170, %175 : vector<4x128xf32>
    %177 = vector.extract_strided_slice %125 {offsets = [0, 8], sizes = [4, 1], strides = [1, 1]} : vector<16x16xf32> to vector<4x1xf32>
    %178 = vector.extract_strided_slice %123 {offsets = [8, 0], sizes = [1, 128], strides = [1, 1]} : vector<10x128xf32> to vector<1x128xf32>
    %179 = vector.broadcast %177 : vector<4x1xf32> to vector<4x128xf32>
    %180 = vector.broadcast %178 : vector<1x128xf32> to vector<4x128xf32>
    %181 = arith.mulf %179, %180 : vector<4x128xf32>
    %182 = arith.addf %176, %181 : vector<4x128xf32>
    %183 = vector.extract_strided_slice %125 {offsets = [0, 9], sizes = [4, 1], strides = [1, 1]} : vector<16x16xf32> to vector<4x1xf32>
    %184 = vector.extract_strided_slice %123 {offsets = [9, 0], sizes = [1, 128], strides = [1, 1]} : vector<10x128xf32> to vector<1x128xf32>
    %185 = vector.broadcast %183 : vector<4x1xf32> to vector<4x128xf32>
    %186 = vector.broadcast %184 : vector<1x128xf32> to vector<4x128xf32>
    %187 = arith.mulf %185, %186 : vector<4x128xf32>
    %188 = arith.addf %182, %187 : vector<4x128xf32>
    %189 = arith.truncf %188 : vector<4x128xf32> to vector<4x128xbf16>
    %c0_9 = arith.constant 0 : index
    %c0_10 = arith.constant 0 : index
    %190 = vector.load %arg3[%c0_9, %c0_10] : memref<4x128xbf16, #tpu.memory_space<vmem>>, vector<4x128xbf16>
    tpu.vector_store %arg3[%c0_9, %c0_10], %189 {strides = array<i32>} : memref<4x128xbf16, #tpu.memory_space<vmem>>, vector<4x128xbf16>,
    return
  }
  func.func @transform_0(%arg0: i32) -> (i32, i32) {
    %c0_i32 = arith.constant 0 : i32
    %c0_i32_0 = arith.constant 0 : i32
    return %c0_i32, %arg0 : i32, i32
  }
  func.func @transform_1(%arg0: i32) -> (i32, i32, i32) {
    %c0_i32 = arith.constant 0 : i32
    %c0_i32_0 = arith.constant 0 : i32
    %c0_i32_1 = arith.constant 0 : i32
    %c0_i32_2 = arith.constant 0 : i32
    return %c0_i32, %c0_i32_0, %c0_i32_1 : i32, i32, i32
  }
  func.func @transform_2(%arg0: i32) -> (i32, i32) {
    %c0_i32 = arith.constant 0 : i32
    %c0_i32_0 = arith.constant 0 : i32
    return %c0_i32, %arg0 : i32, i32
  }
}

</mosaic_0001>

<bundles_post_ra>
// kernel: policy_forward_lanes.1
= control target key start
LH: loop header
LB: loop body
LE: loop exit
PB: predicated region body
PF: predicated region fallthrough
CT: control target
= control target key end

     0   :  { %7 = vsyncpa [#allocation3], 0  ;;  %s822_s0 = inlined_call_operand.hbm [shape: bf16[8,128], index: 0, kind: input, shape index: {}]   ;;  %s823_s1 = inlined_call_operand.hbm [shape: f32[3,16,16], index: 1, kind: input, shape index: {}]   ;;  %s824_s2 = inlined_call_operand.hbm [shape: bf16[4,128], index: 2, kind: output, shape index: {}]  }
   0x1   :  { %8 = vsyncpa [#allocation6], 0 }
   0x2   :  { %9 = vsyncpa [#allocation4], 0  ;;  %s614_s9 = smov [#allocation2]   ;;  %s615_s11 = smov [#allocation5]  }
   0x3   :  { %s16_s10 = sshll.u32 %s614_s9, 4  ;;  %s25_s12 = sshll.u32 %s615_s11, 4  ;;  %s17_s10 = int_to_ptr.vmem [resolvable:$true] %s16_s10  ;;  %s645_s12 = int_to_ptr.vmem [resolvable:$true] %s25_s12 }
   0x4   :  { %s542_s15 = scalar_lea.hbm %s822_s0, 64 }
   0x5   :  { %p543_p0 = scmp.ne.s32.totalorder %s822_s0, %s542_s15  ;;  %p546_p1 = scmp.lt.u32.totalorder %s542_s15, %s822_s0 }
   0x7   :  { %p548_p2 = pnand %p546_p1, %p543_p0 }
   0x9   :  { %551 = shalt.err (!%p548_p2)
}
   0xa   :  { %s552_s20 = scalar_lea.vmem %s17_s10, 64  ;;  %p557_p4 = scmp.lt.s32.totalorder %s17_s10, %s17_s10 }
   0xb   :  { %p553_p3 = scmp.ne.s32.totalorder %s17_s10, %s552_s20  ;;  %p558_p5 = scmp.lt.s32.totalorder %s552_s20, %s552_s20 }
   0xd   :  { %p559_p6 = por %p558_p5, %p557_p4 }
   0xf   :  { %p560_p7 = pnand %p559_p6, %p553_p3 }
  0x11   :  { %563 = shalt.err (!%p560_p7)
}
  0x12   :  { %19 = dma.hbm_to_vmem [thread:$0]  %s822_s0, 64, %s17_s10, [#allocation3]  }
  0x13   :  { %s564_s25 = scalar_lea.hbm %s823_s1, 768 }
  0x14   :  { %p565_p8 = scmp.ne.s32.totalorder %s823_s1, %s564_s25  ;;  %p568_p9 = scmp.lt.u32.totalorder %s564_s25, %s823_s1 }
  0x16   :  { %p570_p10 = pnand %p568_p9, %p565_p8 }
  0x18   :  { %573 = shalt.err (!%p570_p10)
}
  0x19   :  { %s574_s30 = scalar_lea.vmem %s645_s12, 768  ;;  %p579_p12 = scmp.lt.s32.totalorder %s645_s12, %s645_s12 }
  0x1a   :  { %p575_p11 = scmp.ne.s32.totalorder %s645_s12, %s574_s30  ;;  %p580_p13 = scmp.lt.s32.totalorder %s574_s30, %s574_s30 }
  0x1c   :  { %p581_p0 = por %p580_p13, %p579_p12 }
  0x1e   :  { %p582_p1 = pnand %p581_p0, %p575_p11 }
  0x20   :  { %585 = shalt.err (!%p582_p1)
}
  0x21   :  { %s616_s0 = smov 128   ;;  %s617_s3 = smov 8  }
  0x22   :  { %31 = dma.hbm_to_vmem [thread:$0]  %s823_s1, 768, %s645_s12, [#allocation6], %s616_s0, %s616_s0, %s617_s3  }
  0x23   :  { %608 = dma.done.wait [#allocation3], 64  }
  0x24   :  { %609 = vsyncadd [#allocation3], 4294967232 }
  0x25   :  { %610 = dma.done.wait [#allocation6], 768  }
  0x26   :  { %611 = vsyncadd [#allocation6], 4294966528  ;;  %v618_v0 = vmov 0   ;;  %v619_v1 = vmov 8   ;;  %v40_v2 = vld [vmem:[#allocation5] sm:$0xff]  ;;  %v41_v3 = vld [vmem:[#allocation5 + $0x8] sm:$0xff]  ;;  %v60_v16 = vlaneseq }
  0x27   :  { %499 = vset.pattern.permute.xlu1 %v618_v0  ;;  %498 = vset.pattern.permute.xlu0 %v619_v1  ;;  %v620_v4 = vmov 1   ;;  %v621_v5 = vmov 2   ;;  %v622_v6 = vmov 4   ;;  %v623_v7 = vmov 3   ;;  %v685_v10 = vld [vmem:[#allocation5 + $0x18] sm:$0xff]  ;;  %v183_v12 = vld [vmem:[#allocation5 + $0x10] sm:$0xff] }
  0x28   :  { %53 = vperm.xlu1 %499, %v40_v2   ;;  %44 = vperm.xlu0 %498, %v40_v2   ;;  %v624_v8 = vmov 5   ;;  %v625_v9 = vmov 7   ;;  %v626_v11 = vmov 10   ;;  %v627_v13 = vmov 6   ;;  %v703_v15 = vld [vmem:[#allocation5 + $0x20] sm:$0xff]  ;;  %s629_s1 = smov [#allocation7]  }
  0x29   :  { %v628_v14 = vmov 9   ;;  %v729_v17 = vshrl.u32 %v60_v16, 7  ;;  %v38_v18 = vld [vmem:[#allocation2] sm:$0xf]  ;;  %s472_s6 = sshll.u32 %s629_s1, 4  ;;  %s473_s6 = int_to_ptr.vmem [resolvable:$true] %s472_s6 }
  0x2a   :  { %v736_v21 = vunpack.c.l.bf16 %v38_v18  ;;  %s586_s7 = scalar_lea.vmem %s473_s6, 32  ;;  %p591_p3 = scmp.lt.s32.totalorder %s473_s6, %s473_s6 }
  0x2b   :  { %v734_v19 = vsub.s32 0, %v729_v17  ;;  %v739_v23 = vsub.s32 1, %v729_v17  ;;  %v750_v33 = vsub.s32 2, %v729_v17  ;;  %v758_v37 = vsub.s32 3, %v729_v17  ;;  %p587_p2 = scmp.ne.s32.totalorder %s473_s6, %s586_s7  ;;  %p592_p4 = scmp.lt.s32.totalorder %s586_s7, %s586_s7 }
  0x2c   :  { %57 = vperm.xlu1 %499, %v41_v3   ;;  %49 = vperm.xlu0 %498, %v41_v3   ;;  %v770_v61 = vsub.s32 4, %v729_v17 }
  0x2d   :  { %v63_v24 = vrot.slane %v736_v21, %v734_v19  ;;  %v79_v27 = vrot.slane %v736_v21, %v739_v23  ;;  %v95_v35 = vrot.slane %v736_v21, %v750_v33  ;;  %v111_v40 = vrot.slane %v736_v21, %v758_v37  ;;  %p593_p5 = por %p592_p4, %p591_p3 }
  0x2f   :  { %p594_p6 = pnand %p593_p5, %p587_p2 }
  0x30   :  { %500 = vset.pattern.permute.xlu1 %v620_v4  ;;  %502 = vset.pattern.permute.xlu0 %v621_v5 }
  0x31   :  { %73 = vperm.xlu1 %500, %v41_v3   ;;  %89 = vperm.xlu0 %502, %v41_v3  }
  0x35   :  { %501 = vset.pattern.permute.xlu1 %v621_v5  ;;  %504 = vset.pattern.permute.xlu0 %v622_v6 }
  0x36   :  { %85 = vperm.xlu1 %501, %v40_v2   ;;  %117 = vperm.xlu0 %504, %v40_v2  }
  0x3a   :  { %503 = vset.pattern.permute.xlu1 %v623_v7  ;;  %507 = vset.pattern.permute.xlu0 %v624_v8 }
  0x3b   :  { %101 = vperm.xlu1 %503, %v40_v2   ;;  %137 = vperm.xlu0 %507, %v41_v3  }
  0x3f   :  { %105 = vperm.xlu1 %503, %v41_v3   ;;  %509 = vset.pattern.permute.xlu0 %v625_v9 }
  0x40   :  { %165 = vperm.xlu0 %509, %v40_v2  }
  0x43   :  { %505 = vset.pattern.permute.xlu1 %v622_v6 }
  0x44   :  { %121 = vperm.xlu1 %505, %v41_v3   ;;  %512 = vset.pattern.permute.xlu0 %v626_v11 }
  0x45   :  { %192 = vperm.xlu0 %512, %v685_v10  }
  0x48   :  { %506 = vset.pattern.permute.xlu1 %v624_v8 }
  0x49   :  { %133 = vperm.xlu1 %506, %v40_v2   ;;  %513 = vset.pattern.permute.xlu0 %v620_v4 }
  0x4a   :  { %69 = vperm.xlu0 %513, %v40_v2  }
  0x4d   :  { %508 = vset.pattern.permute.xlu1 %v627_v13 }
  0x4e   :  { %149 = vperm.xlu1 %508, %v40_v2   ;;  %212 = vperm.xlu0 %513, %v183_v12  }
  0x52   :  { %153 = vperm.xlu1 %508, %v41_v3   ;;  %521 = vset.pattern.permute.xlu0 %v628_v14 }
  0x53   :  { %340 = vperm.xlu0 %521, %v183_v12  }
  0x56   :  { %510 = vset.pattern.permute.xlu1 %v625_v9 }
  0x57   :  { %169 = vperm.xlu1 %510, %v41_v3   ;;  %522 = vset.pattern.permute.xlu0 %v622_v6 }
  0x58   :  { %260 = vperm.xlu0 %522, %v183_v12  }
  0x5b   :  { %511 = vset.pattern.permute.xlu1 %v626_v11 }
  0x5c   :  { %187 = vperm.xlu1 %511, %v183_v12   ;;  %264 = vperm.xlu0 %522, %v685_v10  }
  0x60   :  { %514 = vset.pattern.permute.xlu1 %v618_v0  ;;  %527 = vset.pattern.permute.xlu0 %v627_v13 }
  0x61   :  { %196 = vperm.xlu1 %514, %v183_v12   ;;  %296 = vperm.xlu0 %527, %v685_v10  }
  0x65   :  { %200 = vperm.xlu1 %514, %v685_v10   ;;  %528 = vset.pattern.permute.xlu0 %v625_v9 }
  0x66   :  { %308 = vperm.xlu0 %528, %v183_v12  }
  0x69   :  { %515 = vset.pattern.permute.xlu1 %v621_v5 }
  0x6a   :  { %228 = vperm.xlu1 %515, %v183_v12   ;;  %312 = vperm.xlu0 %528, %v685_v10  }
  0x6e   :  { %516 = vset.pattern.permute.xlu1 %v623_v7  ;;  %533 = vset.pattern.permute.xlu0 %v623_v7 }
  0x6f   :  { %244 = vperm.xlu1 %516, %v183_v12   ;;  %395 = vperm.xlu0 %533, %v703_v15  }
  0x73   :  { %517 = vset.pattern.permute.xlu1 %v624_v8  ;;  %536 = vset.pattern.permute.xlu0 %v624_v8 }
  0x74   :  { %276 = vperm.xlu1 %517, %v183_v12   ;;  %415 = vperm.xlu0 %536, %v703_v15  }
  0x78   :  { %518 = vset.pattern.permute.xlu1 %v627_v13  ;;  %539 = vset.pattern.permute.xlu0 %v619_v1 }
  0x79   :  { %292 = vperm.xlu1 %518, %v183_v12   ;;  %445 = vperm.xlu0 %539, %v703_v15  }
  0x7d   :  { %519 = vset.pattern.permute.xlu1 %v619_v1  ;;  %541 = vset.pattern.permute.xlu0 %v628_v14 }
  0x7e   :  { %324 = vperm.xlu1 %519, %v183_v12  }
  0x82   :  { %520 = vset.pattern.permute.xlu1 %v620_v4 }
  0x83   :  { %216 = vperm.xlu1 %520, %v685_v10  }
  0x87   :  { %523 = vset.pattern.permute.xlu1 %v621_v5 }
  0x88   :  { %232 = vperm.xlu1 %523, %v685_v10  }
  0x8c   :  { %524 = vset.pattern.permute.xlu1 %v623_v7 }
  0x8d   :  { %248 = vperm.xlu1 %524, %v685_v10  }
  0x91   :  { %525 = vset.pattern.permute.xlu1 %v624_v8  ;;  %v783_v8 = vsub.s32 7, %v729_v17 }
  0x92   :  { %280 = vperm.xlu1 %525, %v685_v10  }
  0x96   :  { %526 = vset.pattern.permute.xlu1 %v618_v0  ;;  %v127_v0 = vrot.slane %v736_v21, %v770_v61 }
  0x97   :  { %365 = vperm.xlu1 %526, %v703_v15  }
  0x9b   :  { %529 = vset.pattern.permute.xlu1 %v626_v11 }
  0x9c   :  { %361 = vperm.xlu1 %529, %v703_v15  }
  0xa0   :  { %530 = vset.pattern.permute.xlu1 %v620_v4  ;;  %v775_v4 = vsub.s32 5, %v729_v17 }
  0xa1   :  { %375 = vperm.xlu1 %530, %v703_v15  }
  0xa2   :  { %v143_v7 = vrot.slane %v736_v21, %v775_v4 }
  0xa5   :  { %531 = vset.pattern.permute.xlu1 %v621_v5 }
  0xa6   :  { %385 = vperm.xlu1 %531, %v703_v15  }
  0xa7   :  { %v54_v20 = vpop.permute.xlu1 %53  ;;  %v45_v22 = vpop.permute.xlu0 %44 }
  0xa8   :  { %v64_v55 = vmul.f32 %v63_v24, %v54_v20 }
  0xaa   :  { %532 = vset.pattern.permute.xlu1 %v619_v1  ;;  %v66_v57 = vadd.f32 %v64_v55, %v45_v22 }
  0xab   :  { %328 = vperm.xlu1 %532, %v685_v10   ;;  %v58_v25 = vpop.permute.xlu1 %57  ;;  %v50_v28 = vpop.permute.xlu0 %49 }
  0xac   :  { %v65_v26 = vmul.f32 %v63_v24, %v58_v25 }
  0xae   :  { %v67_v30 = vadd.f32 %v65_v26, %v50_v28 }
  0xaf   :  { %534 = vset.pattern.permute.xlu1 %v628_v14 }
  0xb0   :  { %344 = vperm.xlu1 %534, %v685_v10   ;;  %v74_v29 = vpop.permute.xlu1 %73  ;;  %v90_v36 = vpop.permute.xlu0 %89 }
  0xb1   :  { %v81_v31 = vmul.f32 %v79_v27, %v74_v29  ;;  %v97_v39 = vmul.f32 %v95_v35, %v90_v36 }
  0xb3   :  { %v83_v32 = vadd.f32 %v81_v31, %v67_v30 }
  0xb4   :  { %535 = vset.pattern.permute.xlu1 %v622_v6  ;;  %v778_v6 = vsub.s32 6, %v729_v17 }
  0xb5   :  { %405 = vperm.xlu1 %535, %v703_v15   ;;  %v86_v34 = vpop.permute.xlu1 %85  ;;  %v118_v41 = vpop.permute.xlu0 %117  ;;  %v99_v43 = vadd.f32 %v97_v39, %v83_v32 }
  0xb6   :  { %v96_v60 = vmul.f32 %v95_v35, %v86_v34  ;;  %v128_v3 = vmul.f32 %v127_v0, %v118_v41  ;;  %v159_v12 = vrot.slane %v736_v21, %v778_v6 }
  0xb9   :  { %537 = vset.pattern.permute.xlu1 %v627_v13  ;;  %v175_v13 = vrot.slane %v736_v21, %v783_v8 }
  0xba   :  { %425 = vperm.xlu1 %537, %v703_v15   ;;  %v102_v38 = vpop.permute.xlu1 %101  ;;  %v138_v47 = vpop.permute.xlu0 %137 }
  0xbb   :  { %v112_v1 = vmul.f32 %v111_v40, %v102_v38  ;;  %v145_v41 = vmul.f32 %v143_v7, %v138_v47 }
  0xbe   :  { %538 = vset.pattern.permute.xlu1 %v625_v9  ;;  %v106_v42 = vpop.permute.xlu1 %105 }
  0xbf   :  { %v113_v44 = vmul.f32 %v111_v40, %v106_v42  ;;  %435 = vperm.xlu1 %538, %v703_v15   ;;  %v166_v49 = vpop.permute.xlu0 %165 }
  0xc0   :  { %v176_v18 = vmul.f32 %v175_v13, %v166_v49 }
  0xc1   :  { %v115_v45 = vadd.f32 %v113_v44, %v99_v43 }
  0xc3   :  { %540 = vset.pattern.permute.xlu1 %v628_v14  ;;  %v122_v46 = vpop.permute.xlu1 %121 }
  0xc4   :  { %455 = vperm.xlu1 %540, %v703_v15   ;;  %v767_v51 = vpop.permute.xlu0 %192  ;;  %v129_v21 = vmul.f32 %v127_v0, %v122_v46 }
  0xc6   :  { %v131_v42 = vadd.f32 %v129_v21, %v115_v45 }
  0xc8   :  { %v134_v48 = vpop.permute.xlu1 %133 }
  0xc9   :  { %v70_v53 = vpop.permute.xlu0 %69  ;;  %v144_v11 = vmul.f32 %v143_v7, %v134_v48 }
  0xca   :  { %v80_v56 = vmul.f32 %v79_v27, %v70_v53 }
  0xcc   :  { %v82_v59 = vadd.f32 %v80_v56, %v66_v57  ;;  %v147_v56 = vadd.f32 %v145_v41, %v131_v42 }
  0xcd   :  { %v150_v50 = vpop.permute.xlu1 %149  ;;  %v213_v25 = vpop.permute.xlu0 %212 }
  0xce   :  { %v98_v63 = vadd.f32 %v96_v60, %v82_v59  ;;  %v160_v16 = vmul.f32 %v159_v12, %v150_v50 }
  0xd0   :  { %v114_v5 = vadd.f32 %v112_v1, %v98_v63 }
  0xd1   :  { %v154_v52 = vpop.permute.xlu1 %153 }
  0xd2   :  { %v130_v9 = vadd.f32 %v128_v3, %v114_v5  ;;  %v341_v27 = vpop.permute.xlu0 %340  ;;  %v161_v50 = vmul.f32 %v159_v12, %v154_v52 }
  0xd4   :  { %v146_v14 = vadd.f32 %v144_v11, %v130_v9  ;;  %v163_v59 = vadd.f32 %v161_v50, %v147_v56 }
  0xd6   :  { %v170_v54 = vpop.permute.xlu1 %169  ;;  %v162_v20 = vadd.f32 %v160_v16, %v146_v14 }
  0xd7   :  { %v261_v32 = vpop.permute.xlu0 %260  ;;  %v177_v57 = vmul.f32 %v175_v13, %v170_v54 }
  0xd8   :  { %v178_v24 = vadd.f32 %v176_v18, %v162_v20 }
  0xd9   :  { %v179_v0 = vadd.f32 %v177_v57, %v163_v59 }
  0xda   :  { %v180_v17 = vmax.f32 %v178_v24, 0.0 }
  0xdb   :  { %v188_v58 = vpop.permute.xlu1 %187  ;;  %v265_v49 = vpop.permute.xlu0 %264  ;;  %v181_v52 = vmax.f32 %v179_v0, 0.0 }
  0xdc   :  { %v206_v28 = vrot.slane %v180_v17, %v734_v19  ;;  %v222_v31 = vrot.slane %v180_v17, %v739_v23  ;;  %v238_v36 = vrot.slane %v180_v17, %v750_v33  ;;  %v254_v40 = vrot.slane %v180_v17, %v758_v37 }
  0xdd   :  { %v270_v53 = vrot.slane %v180_v17, %v770_v61  ;;  %v302_v45 = vrot.slane %v180_v17, %v778_v6  ;;  %v318_v54 = vrot.slane %v180_v17, %v783_v8 }
  0xde   :  { %v223_v38 = vmul.f32 %v222_v31, %v213_v25 }
  0xdf   :  { %v271_v60 = vmul.f32 %v270_v53, %v261_v32  ;;  %v272_v21 = vmul.f32 %v270_v53, %v265_v49 }
  0xe0   :  { %v197_v62 = vpop.permute.xlu1 %196  ;;  %v297_v63 = vpop.permute.xlu0 %296 }
  0xe1   :  { %v207_v30 = vmul.f32 %v206_v28, %v197_v62  ;;  %v286_v62 = vrot.slane %v180_v17, %v775_v4 }
  0xe3   :  { %v209_v35 = vadd.f32 %v207_v30, %v188_v58 }
  0xe4   :  { %v201_v2 = vpop.permute.xlu1 %200 }
  0xe5   :  { %v225_v43 = vadd.f32 %v223_v38, %v209_v35  ;;  %v208_v9 = vmul.f32 %v206_v28, %v201_v2 }
  0xe7   :  { %v210_v16 = vadd.f32 %v208_v9, %v767_v51 }
  0xe9   :  { %v229_v10 = vpop.permute.xlu1 %228 }
  0xea   :  { %v239_v39 = vmul.f32 %v238_v36, %v229_v10  ;;  %v309_v10 = vpop.permute.xlu0 %308 }
  0xeb   :  { %v319_v14 = vmul.f32 %v318_v54, %v309_v10 }
  0xec   :  { %v241_v55 = vadd.f32 %v239_v39, %v225_v43 }
  0xee   :  { %v245_v15 = vpop.permute.xlu1 %244  ;;  %v313_v42 = vpop.permute.xlu0 %312 }
  0xef   :  { %v255_v44 = vmul.f32 %v254_v40, %v245_v15  ;;  %v334_v15 = vrot.slane %v181_v52, %v734_v19  ;;  %v320_v49 = vmul.f32 %v318_v54, %v313_v42 }
  0xf1   :  { %v257_v46 = vadd.f32 %v255_v44, %v241_v55 }
  0xf3   :  { %v277_v22 = vpop.permute.xlu1 %276  ;;  %v273_v47 = vadd.f32 %v271_v60, %v257_v46  ;;  %v396_v60 = vpop.permute.xlu0 %395 }
  0xf4   :  { %v287_v1 = vmul.f32 %v286_v62, %v277_v22 }
  0xf6   :  { %v289_v7 = vadd.f32 %v287_v1, %v273_v47 }
  0xf7   :  { %v416_v9 = vpop.permute.xlu0 %415 }
  0xf8   :  { %v293_v26 = vpop.permute.xlu1 %292 }
  0xf9   :  { %v303_v3 = vmul.f32 %v302_v45, %v293_v26  ;;  %v350_v26 = vrot.slane %v181_v52, %v739_v23 }
  0xfb   :  { %v305_v11 = vadd.f32 %v303_v3, %v289_v7  ;;  %v351_v17 = vmul.f32 %v350_v26, %v341_v27 }
  0xfd   :  { %v325_v29 = vpop.permute.xlu1 %324  ;;  %v321_v20 = vadd.f32 %v319_v14, %v305_v11 }
  0xfe   :  { %v335_v24 = vmul.f32 %v334_v15, %v325_v29 }
 0x100   :  { %v337_v28 = vadd.f32 %v335_v24, %v321_v20 }
 0x102   :  { %v217_v34 = vpop.permute.xlu1 %216 }
 0x103   :  { %v224_v12 = vmul.f32 %v222_v31, %v217_v34  ;;  %v353_v34 = vadd.f32 %v351_v17, %v337_v28 }
 0x105   :  { %v226_v22 = vadd.f32 %v224_v12, %v210_v16  ;;  %v355_v39 = vmax.f32 %v353_v34, 0.0  ;;  %v446_v16 = vpop.permute.xlu0 %445 }
 0x107   :  { %v233_v48 = vpop.permute.xlu1 %232  ;;  %v371_v29 = vrot.slane %v355_v39, %v734_v19  ;;  %v391_v27 = vrot.slane %v355_v39, %v750_v33  ;;  %v401_v46 = vrot.slane %v355_v39, %v758_v37  ;;  %v411_v1 = vrot.slane %v355_v39, %v770_v61 }
 0x108   :  { %v240_v18 = vmul.f32 %v238_v36, %v233_v48  ;;  %v304_v36 = vmul.f32 %v302_v45, %v297_v63  ;;  %v421_v33 = vrot.slane %v355_v39, %v775_v4  ;;  %v441_v61 = vrot.slane %v355_v39, %v783_v8 }
 0x109   :  { %v402_v47 = vmul.f32 %v401_v46, %v396_v60 }
 0x10a   :  { %v242_v2 = vadd.f32 %v240_v18, %v226_v22  ;;  %v422_v11 = vmul.f32 %v421_v33, %v416_v9 }
 0x10c   :  { %v249_v58 = vpop.permute.xlu1 %248 }
 0x10d   :  { %v256_v25 = vmul.f32 %v254_v40, %v249_v58  ;;  %v381_v40 = vrot.slane %v355_v39, %v739_v23 }
 0x10f   :  { %v258_v32 = vadd.f32 %v256_v25, %v242_v2 }
 0x111   :  { %v281_v5 = vpop.permute.xlu1 %280  ;;  %v274_v35 = vadd.f32 %v272_v21, %v258_v32 }
 0x112   :  { %v288_v38 = vmul.f32 %v286_v62, %v281_v5 }
 0x114   :  { %v290_v51 = vadd.f32 %v288_v38, %v274_v35 }
 0x116   :  { %v366_v13 = vpop.permute.xlu1 %365  ;;  %v306_v43 = vadd.f32 %v304_v36, %v290_v51 }
 0x117   :  { %v372_v48 = vmul.f32 %v371_v29, %v366_v13  ;;  %v431_v13 = vrot.slane %v355_v39, %v778_v6 }
 0x118   :  { %v322_v57 = vadd.f32 %v320_v49, %v306_v43 }
 0x11b   :  { %v362_v30 = vpop.permute.xlu1 %361 }
 0x11c   :  { %v373_v55 = vadd.f32 %v372_v48, %v362_v30 }
 0x120   :  { %v376_v31 = vpop.permute.xlu1 %375 }
 0x121   :  { %v382_v50 = vmul.f32 %v381_v40, %v376_v31 }
 0x123   :  { %v383_v58 = vadd.f32 %v382_v50, %v373_v55 }
 0x125   :  { %v386_v41 = vpop.permute.xlu1 %385 }
 0x126   :  { %v392_v56 = vmul.f32 %v391_v27, %v386_v41 }
 0x128   :  { %v393_v0 = vadd.f32 %v392_v56, %v383_v58 }
 0x12a   :  { %v329_v44 = vpop.permute.xlu1 %328  ;;  %v403_v52 = vadd.f32 %v402_v47, %v393_v0 }
 0x12b   :  { %v336_v53 = vmul.f32 %v334_v15, %v329_v44 }
 0x12d   :  { %v338_v62 = vadd.f32 %v336_v53, %v322_v57 }
 0x12f   :  { %v345_v59 = vpop.permute.xlu1 %344 }
 0x130   :  { %v352_v63 = vmul.f32 %v350_v26, %v345_v59 }
 0x132   :  { %v354_v45 = vadd.f32 %v352_v63, %v338_v62 }
 0x134   :  { %v356_v3 = vmax.f32 %v354_v45, 0.0  ;;  %v406_v5 = vpop.permute.xlu1 %405 }
 0x135   :  { %v412_v7 = vmul.f32 %v411_v1, %v406_v5 }
 0x136   :  { %v451_v10 = vrot.slane %v356_v3, %v734_v19  ;;  %v461_v37 = vrot.slane %v356_v3, %v739_v23 }
 0x137   :  { %v413_v54 = vadd.f32 %v412_v7, %v403_v52 }
 0x138   :  { %v452_v24 = vmul.f32 %v451_v10, %v446_v16 }
 0x139   :  { %v426_v12 = vpop.permute.xlu1 %425  ;;  %v423_v14 = vadd.f32 %v422_v11, %v413_v54 }
 0x13a   :  { %v432_v15 = vmul.f32 %v431_v13, %v426_v12 }
 0x13c   :  { %v433_v20 = vadd.f32 %v432_v15, %v423_v14 }
 0x13e   :  { %v436_v18 = vpop.permute.xlu1 %435 }
 0x13f   :  { %v442_v4 = vmul.f32 %v441_v61, %v436_v18 }
 0x141   :  { %v443_v22 = vadd.f32 %v442_v4, %v433_v20 }
 0x143   :  { %v456_v25 = vpop.permute.xlu1 %455  ;;  %v453_v26 = vadd.f32 %v452_v24, %v443_v22 }
 0x144   :  { %v462_v19 = vmul.f32 %v461_v37, %v456_v25 }
 0x146   :  { %v463_v23 = vadd.f32 %v462_v19, %v453_v26 }
 0x148   :  { %v464_v30 = vpack.c.bf16 %v463_v23, %v463_v23 }
 0x14a   :  { %465 = vst [vmem:[#allocation7] sm:$0x3] %v464_v30 }
 0x14b   :  { %597 = shalt.err (!%p594_p6)
}
 0x14c   :  { %s598_s10 = scalar_lea.hbm %s824_s2, 32 }
 0x14d   :  { %p599_p7 = scmp.ne.s32.totalorder %s824_s2, %s598_s10  ;;  %p602_p8 = scmp.lt.u32.totalorder %s598_s10, %s824_s2 }
 0x14f   :  { %p604_p9 = pnand %p602_p8, %p599_p7 }
 0x151   :  { %607 = shalt.err (!%p604_p9)
}
 0x152   :  { %475 = dma.vmem_to_hbm [thread:$0]  %s473_s6, 32, %s824_s2, [#allocation4]  }
 0x153   :  { %612 = dma.done.wait [#allocation4], 32  }
 0x154   :  { %613 = vsyncadd [#allocation4], 4294967264 }
 0x155   :  { %479 = vsyncpa [#allocation3], 1 }
 0x156   :  { %480 = vsyncpa [#allocation6], 1 }
 0x157   :  { %481 = vsyncpa [#allocation4], 1 }

</bundles_post_ra>
